<compile_context>
chip_gen: v7x
topology: tpu7x:2x2x1
jax: 0.10.0
libtpu: 0.0.40
codegen_flags: <defaults>
</compile_context>

<pallas_src>
import functools

import jax
import jax.numpy as jnp
from jax.experimental import pallas as pl
from jax.experimental.pallas import tpu as pltpu


def textcnn_kernel(xe_ref, w_ref, b_ref, o_ref, *, seq_len, max_k):
    """One batch block per grid step.

    xe_ref : (B, Lp, E)       bf16  zero-padded embedded tokens (Lp = L + max_k - 1)
    w_ref  : (max_k*E, C)     bf16  fused im2col weights (all filter sizes packed)
    b_ref  : (1, C)           f32   concatenated conv biases
    o_ref  : (B, C, L)        f32   softmax(relu(conv)) output, NCL (PyTorch layout)
    """
    B, Lp, E = xe_ref.shape
    L = seq_len
    C = o_ref.shape[1]

    x = xe_ref[...]                                        # (B, Lp, E) bf16

    # im2col: concat the max_k shifted length-L windows along the feature axis.
    cols = [x[:, j:j + L, :].reshape(B * L, E) for j in range(max_k)]
    xcol = jnp.concatenate(cols, axis=-1)                  # (B*L, max_k*E) bf16

    # Single fused matmul covering every filter size (K = max_k*E).
    acc = jnp.dot(xcol, w_ref[...],
                  preferred_element_type=jnp.float32)      # (B*L, C) f32
    acc = acc + b_ref[...]                                 # bias (row broadcast)
    acc = jnp.maximum(acc, 0.0)                            # ReLU
    # TODO(synk): train-mode dropout (random masking) not implemented; eval-mode identity.

    # Softmax over channels (lane axis), all f32.
    m = jnp.max(acc, axis=-1, keepdims=True)
    e = jnp.exp(acc - m)
    s = jnp.sum(e, axis=-1, keepdims=True)
    sm = e * pl.reciprocal(s, approx=True)                 # (B*L, C)

    # Write NCL directly: channels on sublanes, length on lanes.
    smB = sm.reshape(B, L, C)                              # (B, L, C)
    for b in range(B):                                     # static, small B
        o_ref[b] = smB[b].T                                # (C, L)


def textcnn_forward(tokens, emb_table, conv_weights, conv_biases, filter_sizes,
                    *, max_batch_block=8):
    """tokens: (N, L) int32.  Returns (N, C_total, L) float32 (PyTorch NCL)."""
    N, L = tokens.shape
    V, E = emb_table.shape
    F = conv_weights[0].shape[0]
    C_total = F * len(filter_sizes)

    max_k = max(filter_sizes)
    pad_left_max = (max_k - 1) // 2
    pad_right_max = max_k // 2
    Lp = L + pad_left_max + pad_right_max
    K_tot = max_k * E

    # Batch block: largest divisor of N not exceeding max_batch_block, so the
    # matmul M dimension is B*L rows.  (On v7x keep the grid >= 2 blocks so
    # both TensorCores are fed via the "parallel" grid axis.)
    B = 1
    for d in range(1, min(N, max_batch_block) + 1):
        if N % d == 0:
            B = d

    # Glue: embedding gather (bf16) + zero padding along length.
    # TODO(synk): fuse the gather/pad into the kernel (scalar-prefetched tokens
    # + in-kernel DMA gather) to remove one (N, Lp, E) HBM round trip.
    xe = emb_table.astype(jnp.bfloat16)[tokens]                    # (N, L, E)
    xe_padded = jnp.pad(xe, ((0, 0), (pad_left_max, pad_right_max), (0, 0)))

    # Pack all taps of all filters into one (max_k*E, C_total) matrix.
    # Row block t multiplies x_pad[l + t]; filter si (size k, left pad p) uses
    # row blocks t = pad_left_max - p + j for tap j; other row blocks are zero.
    # (PyTorch 'same': left pad = (k-1)//2, right pad = k//2.)
    w_packed = jnp.zeros((K_tot, C_total), jnp.float32)
    for si, (W, k) in enumerate(zip(conv_weights, filter_sizes)):
        off = pad_left_max - (k - 1) // 2
        for j in range(k):
            t = off + j
            w_packed = w_packed.at[t * E:(t + 1) * E, si * F:(si + 1) * F].set(
                W[:, :, j].T.astype(jnp.float32))
    w_packed = w_packed.astype(jnp.bfloat16)
    b_packed = jnp.concatenate(conv_biases).reshape(1, C_total).astype(jnp.float32)

    kernel = functools.partial(textcnn_kernel, seq_len=L, max_k=max_k)

    return pl.pallas_call(
        kernel,
        out_shape=jax.ShapeDtypeStruct((N, C_total, L), jnp.float32),
        grid_spec=pltpu.PrefetchScalarGridSpec(
            num_scalar_prefetch=0,
            grid=(N // B,),
            in_specs=[
                pl.BlockSpec((B, Lp, E), lambda n: (n, 0, 0)),
                pl.BlockSpec((K_tot, C_total), lambda n: (0, 0)),
                pl.BlockSpec((1, C_total), lambda n: (0, 0)),
            ],
            out_specs=pl.BlockSpec((B, C_total, L), lambda n: (n, 0, 0)),
        ),
        compiler_params=pltpu.CompilerParams(
            dimension_semantics=("parallel",)),
    )(xe_padded, w_packed, b_packed)


def textcnn_reference(tokens, emb_table, conv_weights, conv_biases, filter_sizes):
    """Pure-JAX f32 reference mirroring the PyTorch forward (eval-mode dropout)."""
    xe = emb_table[tokens].astype(jnp.float32)          # (N, L, E)
    xc = jnp.transpose(xe, (0, 2, 1))                   # (N, E, L)
    outs = []
    for W, b, k in zip(conv_weights, conv_biases, filter_sizes):
        pad_l, pad_r = (k - 1) // 2, k // 2
        y = jax.lax.conv_general_dilated(
            xc, W.astype(jnp.float32),
            window_strides=(1,), padding=[(pad_l, pad_r)],
            dimension_numbers=('NCH', 'OIH', 'NCH'))
        y = y + b[None, :, None]
        outs.append(jnp.maximum(y, 0.0))
    cat = jnp.concatenate(outs, axis=1)                 # (N, C_total, L)
    return jax.nn.softmax(cat, axis=1)


if __name__ == "__main__":
    # Module hyper-params (synthetic, deterministic, small).
    vocab_size, embed_size, filter_num = 32, 32, 16
    filter_sizes = (3, 5)
    dropout_rate = 0.5                                  # eval-mode -> identity
    N, L = 2, 16

    key = jax.random.PRNGKey(0)
    keys = jax.random.split(key, 2 + 2 * len(filter_sizes))
    k_emb, k_tok = keys[0], keys[1]
    k_conv = keys[2:]

    emb_table = jax.random.normal(k_emb, (vocab_size, embed_size), jnp.float32)
    tokens = jax.random.randint(k_tok, (N, L), 0, vocab_size, jnp.int32)

    conv_ws, conv_bs = [], []
    for i, k in enumerate(filter_sizes):
        bound = 1.0 / float(embed_size * k) ** 0.5
        conv_ws.append(jax.random.uniform(
            k_conv[2 * i], (filter_num, embed_size, k), jnp.float32, -bound, bound))
        conv_bs.append(jax.random.uniform(
            k_conv[2 * i + 1], (filter_num,), jnp.float32, -bound, bound))

    out = textcnn_forward(tokens, emb_table, conv_ws, conv_bs, filter_sizes)
    out = jax.block_until_ready(out)

    assert out.shape == (N, filter_num * len(filter_sizes), L), out.shape

    ref = textcnn_reference(tokens, emb_table, conv_ws, conv_bs, filter_sizes)
    max_err = float(jnp.max(jnp.abs(out - ref)))
    # bf16 matmul operands + approx reciprocal -> looser tolerance than pure f32.
    assert max_err < 2e-2, max_err

    print("KERNEL_OK")
</pallas_src>

<mosaic_0001>
module attributes {stable_mosaic.version = 11 : i64} {
  func.func @textcnn_kernel(%arg0: i32, %arg1: memref<2x20x32xbf16, #tpu.memory_space<vmem>>, %arg2: memref<160x32xbf16, #tpu.memory_space<vmem>>, %arg3: memref<1x32xf32, #tpu.memory_space<vmem>>, %arg4: memref<2x32x16xf32, #tpu.memory_space<vmem>>) attributes {dimension_semantics = [#tpu.dimension_semantics<parallel>], iteration_bounds = array<i64: 1>, scalar_prefetch = 0 : i64, scratch_operands = 0 : i64, tpu.core_type = #tpu.core_type<tc>, window_params = [{transform_indices = @transform_0, window_bounds = array<i64: 2, 20, 32>}, {pipeline_mode = #tpu.pipeline_mode<synchronous>, transform_indices = @transform_1, window_bounds = array<i64: 160, 32>}, {pipeline_mode = #tpu.pipeline_mode<synchronous>, transform_indices = @transform_2, window_bounds = array<i64: 1, 32>}, {transform_indices = @transform_3, window_bounds = array<i64: 2, 32, 16>}]} {
    %c0 = arith.constant 0 : index
    %c0_0 = arith.constant 0 : index
    %c0_1 = arith.constant 0 : index
    %0 = vector.load %arg1[%c0, %c0_0, %c0_1] : memref<2x20x32xbf16, #tpu.memory_space<vmem>>, vector<2x20x32xbf16>
    %1 = vector.extract_strided_slice %0 {offsets = [0, 0, 0], sizes = [2, 16, 32], strides = [1, 1, 1]} : vector<2x20x32xbf16> to vector<2x16x32xbf16>
    %2 = vector.shape_cast %1 : vector<2x16x32xbf16> to vector<32x32xbf16>
    %3 = vector.extract_strided_slice %0 {offsets = [0, 1, 0], sizes = [2, 16, 32], strides = [1, 1, 1]} : vector<2x20x32xbf16> to vector<2x16x32xbf16>
    %4 = vector.shape_cast %3 : vector<2x16x32xbf16> to vector<32x32xbf16>
    %5 = vector.extract_strided_slice %0 {offsets = [0, 2, 0], sizes = [2, 16, 32], strides = [1, 1, 1]} : vector<2x20x32xbf16> to vector<2x16x32xbf16>
    %6 = vector.shape_cast %5 : vector<2x16x32xbf16> to vector<32x32xbf16>
    %7 = vector.extract_strided_slice %0 {offsets = [0, 3, 0], sizes = [2, 16, 32], strides = [1, 1, 1]} : vector<2x20x32xbf16> to vector<2x16x32xbf16>
    %8 = vector.shape_cast %7 : vector<2x16x32xbf16> to vector<32x32xbf16>
    %9 = vector.extract_strided_slice %0 {offsets = [0, 4, 0], sizes = [2, 16, 32], strides = [1, 1, 1]} : vector<2x20x32xbf16> to vector<2x16x32xbf16>
    %10 = vector.shape_cast %9 : vector<2x16x32xbf16> to vector<32x32xbf16>
    %11 = tpu.concatenate %2, %4, %6, %8, %10 in 1 : vector<32x32xbf16>, vector<32x32xbf16>, vector<32x32xbf16>, vector<32x32xbf16>, vector<32x32xbf16> -> vector<32x160xbf16>
    %c0_2 = arith.constant 0 : index
    %c0_3 = arith.constant 0 : index
    %12 = vector.load %arg2[%c0_2, %c0_3] : memref<160x32xbf16, #tpu.memory_space<vmem>>, vector<160x32xbf16>
    %cst = arith.constant dense<0.000000e+00> : vector<32x32xf32>
    %13 = tpu.matmul %11, %12, %cst {dimension_numbers = #tpu.dot_dimension_numbers<[1], [0], [0], [1], [0, 0, 1, 1], [], []>} : vector<32x160xbf16>, vector<160x32xbf16>, vector<32x32xf32> -> vector<32x32xf32>
    %c0_4 = arith.constant 0 : index
    %c0_5 = arith.constant 0 : index
    %14 = vector.load %arg3[%c0_4, %c0_5] : memref<1x32xf32, #tpu.memory_space<vmem>>, vector<1x32xf32>
    %15 = vector.broadcast %14 : vector<1x32xf32> to vector<32x32xf32>
    %16 = arith.addf %13, %15 : vector<32x32xf32>
    %cst_6 = arith.constant 0.000000e+00 : f32
    %17 = vector.broadcast %cst_6 : f32 to vector<32x32xf32>
    %18 = arith.maximumf %16, %17 : vector<32x32xf32>
    %cst_7 = arith.constant dense<0xFF800000> : vector<32xf32>
    %19 = vector.multi_reduction <maximumf>, %18, %cst_7 [1] : vector<32x32xf32> to vector<32xf32>
    %20 = vector.shape_cast %19 : vector<32xf32> to vector<32x1xf32>
    %21 = vector.broadcast %20 : vector<32x1xf32> to vector<32x32xf32>
    %22 = arith.subf %18, %21 : vector<32x32xf32>
    %23 = math.exp %22 : vector<32x32xf32>
    %cst_8 = arith.constant dense<0.000000e+00> : vector<32xf32>
    %24 = vector.multi_reduction <add>, %23, %cst_8 [1] : vector<32x32xf32> to vector<32xf32>
    %25 = vector.shape_cast %24 : vector<32xf32> to vector<32x1xf32>
    %26 = tpu.reciprocal %25 {approx = true} : vector<32x1xf32> -> vector<32x1xf32>
    %27 = vector.broadcast %26 : vector<32x1xf32> to vector<32x32xf32>
    %28 = arith.mulf %23, %27 : vector<32x32xf32>
    %29 = vector.shape_cast %28 : vector<32x32xf32> to vector<2x16x32xf32>
    %30 = vector.extract_strided_slice %29 {offsets = [0, 0, 0], sizes = [1, 16, 32], strides = [1, 1, 1]} : vector<2x16x32xf32> to vector<1x16x32xf32>
    %31 = vector.shape_cast %30 : vector<1x16x32xf32> to vector<16x32xf32>
    %32 = tpu.transpose %31, [1, 0] : vector<16x32xf32> -> vector<32x16xf32>
    %c0_9 = arith.constant 0 : index
    %c0_10 = arith.constant 0 : index
    %c0_11 = arith.constant 0 : index
    %33 = vector.load %arg4[%c0_9, %c0_10, %c0_11] : memref<2x32x16xf32, #tpu.memory_space<vmem>>, vector<1x32x16xf32>
    %34 = vector.shape_cast %33 : vector<1x32x16xf32> to vector<32x16xf32>
    %35 = vector.shape_cast %32 : vector<32x16xf32> to vector<1x32x16xf32>
    tpu.vector_store %arg4[%c0_9, %c0_10, %c0_11], %35 {strides = array<i32>} : memref<2x32x16xf32, #tpu.memory_space<vmem>>, vector<1x32x16xf32>,
    %36 = vector.extract_strided_slice %29 {offsets = [1, 0, 0], sizes = [1, 16, 32], strides = [1, 1, 1]} : vector<2x16x32xf32> to vector<1x16x32xf32>
    %37 = vector.shape_cast %36 : vector<1x16x32xf32> to vector<16x32xf32>
    %38 = tpu.transpose %37, [1, 0] : vector<16x32xf32> -> vector<32x16xf32>
    %c1 = arith.constant 1 : index
    %c0_12 = arith.constant 0 : index
    %c0_13 = arith.constant 0 : index
    %39 = vector.load %arg4[%c1, %c0_12, %c0_13] : memref<2x32x16xf32, #tpu.memory_space<vmem>>, vector<1x32x16xf32>
    %40 = vector.shape_cast %39 : vector<1x32x16xf32> to vector<32x16xf32>
    %41 = vector.shape_cast %38 : vector<32x16xf32> to vector<1x32x16xf32>
    tpu.vector_store %arg4[%c1, %c0_12, %c0_13], %41 {strides = array<i32>} : memref<2x32x16xf32, #tpu.memory_space<vmem>>, vector<1x32x16xf32>,
    return
  }
  func.func @transform_0(%arg0: i32) -> (i32, i32, i32) {
    %c0_i32 = arith.constant 0 : i32
    %c0_i32_0 = arith.constant 0 : i32
    %c0_i32_1 = arith.constant 0 : i32
    return %arg0, %c0_i32, %c0_i32_0 : i32, i32, i32
  }
  func.func @transform_1(%arg0: i32) -> (i32, i32) {
    %c0_i32 = arith.constant 0 : i32
    %c0_i32_0 = arith.constant 0 : i32
    %c0_i32_1 = arith.constant 0 : i32
    return %c0_i32, %c0_i32_0 : i32, i32
  }
  func.func @transform_2(%arg0: i32) -> (i32, i32) {
    %c0_i32 = arith.constant 0 : i32
    %c0_i32_0 = arith.constant 0 : i32
    %c0_i32_1 = arith.constant 0 : i32
    return %c0_i32, %c0_i32_0 : i32, i32
  }
  func.func @transform_3(%arg0: i32) -> (i32, i32, i32) {
    %c0_i32 = arith.constant 0 : i32
    %c0_i32_0 = arith.constant 0 : i32
    %c0_i32_1 = arith.constant 0 : i32
    return %arg0, %c0_i32, %c0_i32_0 : i32, i32, i32
  }
}

</mosaic_0001>

<bundles_post_ra>
// kernel: tpu_custom_call.1
= control target key start
LH: loop header
LB: loop body
LE: loop exit
PB: predicated region body
PF: predicated region fallthrough
CT: control target
= control target key end

     0   :  { %vm78_vm0 = vcmask 1042432   ;;  %vm79_vm1 = vcmask 1046532   ;;  %vm21_vm2 = vsmask.f32 3328  ;;  %vm22_vm4 = vsmask.f32 7440  ;;  %s813_s0 = inlined_call_operand.vmem [shape: bf16[2,20,32], index: 0, kind: input, shape index: {}]   ;;  %s814_s1 = inlined_call_operand.vmem [shape: bf16[160,32], index: 1, kind: input, shape index: {}]   ;;  %s815_s2 = inlined_call_operand.vmem [shape: f32[1,32], index: 2, kind: input, shape index: {}]   ;;  %s816_s3 = inlined_call_operand.vmem [shape: f32[2,32,16], index: 3, kind: output, shape index: {}]  }
   0x1   :  { %v585_v0 = vld [vmem:[%s813_s0] sm:$0xf]  ;;  %v590_v1 = vld [vmem:[%s813_s0 + $0x4] sm:$0xf]  ;;  %v595_v2 = vld [vmem:[%s813_s0 + $0x8] sm:$0x3] }
   0x2   :  { %vm597_vm3 = vmor %vm78_vm0, %vm79_vm1  ;;  %v474_v4 = vrot.slane %v585_v0, 9  ;;  %v83_v5 = vrot.slane %v590_v1, 5  ;;  %v86_v6 = vrot.slane %v595_v2, 5  ;;  %v25_v7 = vshrl.u32 %v585_v0, 16  ;;  %v611_v11 = vld [vmem:[%s813_s0 + $0xc] sm:$0xf] }
   0x3   :  { %v28_v8 = vshll.u32 %v585_v0, 16  ;;  %v34_v9 = vshll.u32 %v590_v1, 16  ;;  %v38_v10 = vshrl.u32 %v590_v1, 16  ;;  %v44_v14 = vshll.u32 %v595_v2, 16  ;;  %v619_v15 = vld [vmem:[%s813_s0 + $0x10] sm:$0xf]  ;;  %vm643_vm5 = vmor %vm21_vm2, %vm22_vm4 }
   0x4   :  { %v84_v12 = vsel %vm597_vm3, %v474_v4, %v83_v5  ;;  %v85_v13 = vrot.slane %v83_v5, 4  ;;  %v624_v16 = vld [vmem:[%s813_s0 + $0x14] sm:$0x3]  ;;  %v478_v17 = vcombine.low %v585_v0, %v590_v1  ;;  %v27_v18 = vrot.slane %v25_v7, 4  ;;  %s558_s0 = smov 64   ;;  %s559_s24 = smov 32  }
   0x5   :  { %v30_v19 = vrot.slane %v28_v8, 5  ;;  %v36_v20 = vrot.slane %v34_v9, 5  ;;  %v40_v21 = vrot.slane %v38_v10, 4  ;;  %v46_v23 = vrot.slane %v44_v14, 5  ;;  %v530_v4 = vld [vmem:[%s814_s1] sm:$0xff]   ;;  %s561_s29 = smov 96  }
   0x6   :  { %v87_v22 = vsel %vm597_vm3, %v85_v13, %v86_v6  ;;  %v636_v24 = vrot.slane %v34_v9, 6  ;;  %v638_v25 = vrot.slane %v44_v14, 6  ;;  %v475_v29 = vrot.slane %v611_v11, 9 }
   0x7   :  { %v482_v26 = vcombine.low %v84_v12, %v87_v22  ;;  %v31_v27 = vor.u32 %v30_v19, %v27_v18  ;;  %v41_v28 = vor.u32 %v40_v21, %v36_v20  ;;  %v90_v31 = vrot.slane %v619_v15, 5 }
   0x8   :  { %v93_v32 = vrot.slane %v624_v16, 5  ;;  %v49_v33 = vshrl.u32 %v611_v11, 16  ;;  %v52_v34 = vshll.u32 %v611_v11, 16  ;;  %v58_v37 = vshll.u32 %v619_v15, 16 }
   0x9   :  { %167 = vrot.lane.b32.xlu1 %v482_v26, %s558_s0  ;;  %v32_v35 = vrot.slane %v31_v27, 4  ;;  %v42_v36 = vrot.slane %v41_v28, 4  ;;  %v62_v38 = vshrl.u32 %v619_v15, 16  ;;  %v91_v39 = vsel %vm597_vm3, %v475_v29, %v90_v31 }
   0xa   :  { %v92_v40 = vrot.slane %v90_v31, 4  ;;  %v51_v41 = vrot.slane %v49_v33, 4  ;;  %v54_v42 = vrot.slane %v52_v34, 5  ;;  %v60_v45 = vrot.slane %v58_v37, 5 }
   0xb   :  { %v37_v43 = vsel %vm643_vm5, %v32_v35, %v36_v20  ;;  %v47_v44 = vsel %vm643_vm5, %v42_v36, %v46_v23  ;;  %v64_v46 = vrot.slane %v62_v38, 4  ;;  %v68_v50 = vshll.u32 %v624_v16, 16 }
   0xc   :  { %v480_v47 = vcombine.low %v37_v43, %v47_v44  ;;  %v94_v48 = vsel %vm597_vm3, %v92_v40, %v93_v32  ;;  %v55_v49 = vor.u32 %v54_v42, %v51_v41  ;;  %vm95_vm6 = vsmask.f32 2304  ;;  %v532_v40 = vld [vmem:[%s814_s1 + $0x10] sm:$0xff]  }
   0xd   :  { %v483_v51 = vcombine.low %v91_v39, %v94_v48  ;;  %v65_v52 = vor.u32 %v64_v46, %v60_v45  ;;  %vm96_vm7 = vsmask.f32 6416  ;;  %v70_v54 = vrot.slane %v68_v50, 5  ;;  %v533_v48 = vld [vmem:[%s814_s1 + $0x18] sm:$0xff]  }
   0xe   :  { %157 = vrot.lane.b32.xlu0 %v480_v47, %s559_s24  ;;  %v56_v53 = vrot.slane %v55_v49, 4  ;;  %v113_v55 = vrot.slane %v49_v33, 5  ;;  %v114_v56 = vrot.slane %v52_v34, 6  ;;  %v117_v58 = vrot.slane %v62_v38, 5  ;;  %vm674_vm8 = vmor %vm95_vm6, %vm96_vm7 }
   0xf   :  { %169 = vrot.lane.b32.xlu1 %v483_v51, %s558_s0  ;;  %v66_v57 = vrot.slane %v65_v52, 4  ;;  %v118_v59 = vrot.slane %v58_v37, 6  ;;  %v122_v60 = vshrl.u32 %v624_v16, 16  ;;  %v125_v63 = vrot.slane %v68_v50, 6  ;;  %v534_v50 = vld [vmem:[%s814_s1 + $0x20] sm:$0xff]   ;;  %v535_v51 = vld [vmem:[%s814_s1 + $0x28] sm:$0xff]  }
  0x10   :  { %v61_v61 = vsel %vm643_vm5, %v56_v53, %v60_v45  ;;  %v115_v62 = vor.u32 %v114_v56, %v113_v55  ;;  %v98_v3 = vrot.slane %v25_v7, 5  ;;  %v99_v13 = vrot.slane %v28_v8, 6  ;;  %v536_v52 = vld [vmem:[%s814_s1 + $0x30] sm:$0xff]   ;;  %v537_v53 = vld [vmem:[%s814_s1 + $0x38] sm:$0xff]   ;;  %v541_v55 = vld [vmem:[%s814_s1 + $0x48] sm:$0xff]  }
  0x11   :  { %v71_v5 = vsel %vm643_vm5, %v66_v57, %v70_v54  ;;  %v119_v9 = vor.u32 %v118_v59, %v117_v58  ;;  %v124_v12 = vrot.slane %v122_v60, 5  ;;  %v102_v18 = vrot.slane %v38_v10, 5  ;;  %v531_v10 = vld [vmem:[%s814_s1 + $0x8] sm:$0xff]   ;;  %v539_v54 = vld [vmem:[%s814_s1 + $0x40] sm:$0xff]  }
  0x12   :  { %v481_v14 = vcombine.low %v61_v61, %v71_v5  ;;  %v116_v7 = vrot.slane %v115_v62, 4  ;;  %v107_v19 = vshrl.u32 %v595_v2, 16  ;;  %v100_v22 = vor.u32 %v99_v13, %v98_v3 }
  0x13   :  { %v121_v20 = vrot.slane %v119_v9, 4  ;;  %v126_v21 = vor.u32 %v125_v63, %v124_v12  ;;  %v104_v26 = vor.u32 %v636_v24, %v102_v18  ;;  %v560_v28 = vmov 0  }
  0x14   :  { %159 = vrot.lane.b32.xlu0 %v481_v14, %s559_s24  ;;  %v120_v23 = vsel %vm674_vm8, %v116_v7, %v119_v9  ;;  %v109_v27 = vrot.slane %v107_v19, 5  ;;  %505 = vmatprep.subr.bf16.mxu1 %v560_v28  ;;  %v101_v29 = vrot.slane %v100_v22, 4  ;;  %v479_v30 = vcombine.low %v611_v11, %v619_v15 }
  0x15   :  { %v127_v8 = vsel %vm674_vm8, %v121_v20, %v126_v21  ;;  %515 = vmatpush1.bf16.msra.mxu1 %v530_v4  ;;  %299 = vmatprep.subr.bf16.mxu0 %v560_v28  ;;  %vm128_vm9 = vcmask 1041408   ;;  %v106_v31 = vrot.slane %v104_v26, 4  ;;  %vm129_vm10 = vcmask 1045508  }
  0x16   :  { %v485_v24 = vcombine.low %v120_v23, %v127_v8  ;;  %v111_v32 = vor.u32 %v638_v25, %v109_v27  ;;  %300 = vmatpush1.bf16.msra.mxu0 %v530_v4  ;;  %506 = vmatprep.subr.bf16.mxu1 %v560_v28  ;;  %v105_v33 = vsel %vm674_vm8, %v101_v29, %v104_v26  ;;  %vm700_vm11 = vmor %vm128_vm9, %vm129_vm10  ;;  %v477_v35 = vrot.slane %v611_v11, 10  ;;  %v488_v11 = vld [vmem:[%s815_s2] ss:$0 sm:$0xff] }
  0x17   :  { %301 = vmatprep.subr.bf16.mxu0 %v560_v28  ;;  %v140_v36 = vrot.slane %v619_v15, 6  ;;  %v143_v37 = vrot.slane %v624_v16, 6  ;;  %v476_v38 = vrot.slane %v585_v0, 10  ;;  %v133_v43 = vrot.slane %v590_v1, 6 }
  0x18   :  { %179 = vrot.lane.b32.xlu1 %v485_v24, %s561_s29  ;;  %v112_v25 = vsel %vm674_vm8, %v106_v31, %v111_v32  ;;  %v136_v16 = vrot.slane %v595_v2, 6  ;;  %vm187_vm12 = vcmask 261120   ;;  %vm194_vm13 = vcmask 523264  }
  0x19   :  { %v484_v39 = vcombine.low %v105_v33, %v112_v25  ;;  %516 = vmatpush1.bf16.msra.mxu1 %v531_v10  ;;  %v141_v41 = vsel %vm700_vm11, %v477_v35, %v140_v36  ;;  %v142_v42 = vrot.slane %v140_v36, 4  ;;  %v134_v45 = vsel %vm700_vm11, %v476_v38, %v133_v43 }
  0x1a   :  { %302 = vmatpush1.bf16.msra.mxu0 %v531_v10  ;;  %507 = vmatprep.subr.bf16.mxu1 %v560_v28  ;;  %v135_v46 = vrot.slane %v133_v43, 4  ;;  %vm199_vm14 = vcmask 785408   ;;  %vm428_vm15 = vcmask 130048  }
  0x1b   :  { %177 = vrot.lane.b32.xlu0 %v484_v39, %s561_s29  ;;  %303 = vmatprep.subr.bf16.mxu0 %v560_v28  ;;  %v144_v44 = vsel %vm700_vm11, %v142_v42, %v143_v37 }
  0x1c   :  { %v487_v47 = vcombine.low %v141_v41, %v144_v44  ;;  %v137_v49 = vsel %vm700_vm11, %v135_v46, %v136_v16 }
  0x1d   :  { %517 = vmatpush1.bf16.msra.mxu1 %v532_v40  ;;  %v486_v2 = vcombine.low %v134_v45, %v137_v49 }
  0x1e   :  { %304 = vmatpush1.bf16.msra.mxu0 %v532_v40  ;;  %508 = vmatprep.subr.bf16.mxu1 %v560_v28 }
  0x1f   :  { %305 = vmatprep.subr.bf16.mxu0 %v560_v28  ;;  %500 = vmatprep.mubr.msk.bf16.mxu1 %vm187_vm12, %v487_v47 }
  0x20   :  { %499 = vmatprep.mubr.msk.bf16.mxu0 %vm187_vm12, %v486_v2 }
  0x21   :  { %518 = vmatpush1.bf16.msra.mxu1 %v533_v48 }
  0x22   :  { %306 = vmatpush1.bf16.msra.mxu0 %v533_v48  ;;  %509 = vmatprep.subr.bf16.mxu1 %v560_v28 }
  0x23   :  { %307 = vmatprep.subr.bf16.mxu0 %v560_v28 }
  0x25   :  { %519 = vmatpush1.bf16.msra.mxu1 %v534_v50 }
  0x26   :  { %308 = vmatpush1.bf16.msra.mxu0 %v534_v50  ;;  %510 = vmatprep.subr.bf16.mxu1 %v560_v28 }
  0x27   :  { %309 = vmatprep.subr.bf16.mxu0 %v560_v28 }
  0x29   :  { %520 = vmatpush1.bf16.msra.mxu1 %v535_v51 }
  0x2a   :  { %310 = vmatpush1.bf16.msra.mxu0 %v535_v51  ;;  %511 = vmatprep.subr.bf16.mxu1 %v560_v28 }
  0x2b   :  { %311 = vmatprep.subr.bf16.mxu0 %v560_v28 }
  0x2d   :  { %521 = vmatpush1.bf16.msra.mxu1 %v536_v52 }
  0x2e   :  { %312 = vmatpush1.bf16.msra.mxu0 %v536_v52  ;;  %512 = vmatprep.subr.bf16.mxu1 %v560_v28 }
  0x2f   :  { %313 = vmatprep.subr.bf16.mxu0 %v560_v28 }
  0x31   :  { %522 = vmatpush1.bf16.msra.mxu1 %v537_v53 }
  0x32   :  { %314 = vmatpush1.bf16.msra.mxu0 %v537_v53  ;;  %513 = vmatprep.subr.bf16.mxu1 %v560_v28 }
  0x33   :  { %315 = vmatprep.subr.bf16.mxu0 %v560_v28 }
  0x35   :  { %523 = vmatpush1.bf16.msra.mxu1 %v539_v54 }
  0x36   :  { %316 = vmatpush1.bf16.msra.mxu0 %v539_v54  ;;  %514 = vmatprep.subr.bf16.mxu1 %v560_v28 }
  0x37   :  { %317 = vmatprep.subr.bf16.mxu0 %v560_v28 }
  0x39   :  { %524 = vmatpush1.bf16.msra.mxu1 %v541_v55 }
  0x3a   :  { %318 = vmatpush1.bf16.msra.mxu0 %v541_v55 }
  0x7b   :  { %v168_v56 = vpop.permute.xlu1 %167 }
  0x80   :  { %v158_v57 = vpop.permute.xlu0 %157 }
  0x81   :  { %v170_v58 = vpop.permute.xlu1 %169  ;;  %v190_v62 = vsel %vm187_vm12, %v478_v17, %v158_v57 }
  0x82   :  { %v196_v5 = vsel %vm194_vm13, %v190_v62, %v168_v56 }
  0x86   :  { %v160_v59 = vpop.permute.xlu0 %159 }
  0x87   :  { %v193_v60 = vsel %vm187_vm12, %v479_v30, %v160_v59 }
  0x88   :  { %v198_v61 = vsel %vm194_vm13, %v193_v60, %v170_v58 }
  0x8a   :  { %v180_v63 = vpop.permute.xlu1 %179 }
  0x8b   :  { %v204_v3 = vsel %vm199_vm14, %v198_v61, %v180_v63 }
  0x8c   :  { %340 = vmatmul.mubr.bf16.vlgmr.msra.gmra.mrb[0].mxu1 %v204_v3 }
  0x8d   :  { %v178_v4 = vpop.permute.xlu0 %177 }
  0x8e   :  { %v201_v6 = vsel %vm199_vm14, %v196_v5, %v178_v4 }
  0x8f   :  { %332 = vmatmul.mubr.bf16.vlgmr.msra.gmra.mrb[0].mxu0 %v201_v6 }
 0x15f   :  { %v341_v15 = vpop.f32.mrb[0].mxu1 }
 0x160   :  { %v342_v9 = vadd.f32 %v488_v11, %v341_v15  ;;  %v343_v12 = vpop.f32.mrb[1].mxu1 }
 0x161   :  { %v344_v13 = vpop.f32.mrb[2].mxu1 }
 0x162   :  { %v350_v14 = vmax.f32 %v342_v9, 0.0  ;;  %v333_v7 = vpop.f32.mrb[0].mxu0  ;;  %v346_v0 = vpop.f32.mrb[3].mxu1  ;;  %v345_v23 = vadd.f32 %v488_v11, %v344_v13 }
 0x163   :  { %v334_v1 = vadd.f32 %v488_v11, %v333_v7  ;;  %v335_v17 = vpop.f32.mrb[1].mxu0 }
 0x164   :  { %v336_v18 = vpop.f32.mrb[2].mxu0  ;;  %v358_v19 = vsel %vm187_vm12, %v350_v14, -inf  ;;  %v351_v28 = vmax.f32 %v345_v23, 0.0 }
 0x165   :  { %v348_v20 = vmax.f32 %v334_v1, 0.0  ;;  %v337_v21 = vadd.f32 %v488_v11, %v336_v18  ;;  %v338_v22 = vpop.f32.mrb[3].mxu0  ;;  %359 = vmax.xlane.f32.xlu1 %v358_v19 }
 0x166   :  { %v361_v29 = vsel %vm187_vm12, %v351_v28, -inf }
 0x167   :  { %v349_v26 = vmax.f32 %v337_v21, 0.0  ;;  %v352_v27 = vsel %vm187_vm12, %v348_v20, -inf }
 0x168   :  { %353 = vmax.xlane.f32.xlu0 %v352_v27 }
 0x169   :  { %v355_v8 = vsel %vm187_vm12, %v349_v26, -inf }
 0x16c   :  { %356 = vmax.xlane.f32.xlu0 %v355_v8 }
 0x170   :  { %362 = vmax.xlane.f32.xlu0 %v361_v29 }
 0x1f2   :  { %v360_v10 = vpop.xlane.xlu1 %359 }
 0x1f3   :  { %v366_v30 = vsub.f32 %v350_v14, %v360_v10 }
 0x1f5   :  { %v372_v24 = vmul.f32 1.442695, %v366_v30  ;;  %v354_v31 = vpop.xlane.xlu0 %353 }
 0x1f6   :  { %v364_v32 = vsub.f32 %v348_v20, %v354_v31 }
 0x1f7   :  { %542 = vpow2.f32 %v372_v24 }
 0x1f8   :  { %v368_v33 = vmul.f32 1.442695, %v364_v32 }
 0x1f9   :  { %v357_v34 = vpop.xlane.xlu0 %356 }
 0x1fa   :  { %544 = vpow2.f32 %v368_v33  ;;  %v365_v35 = vsub.f32 %v349_v26, %v357_v34 }
 0x1fc   :  { %v370_v36 = vmul.f32 1.442695, %v365_v35 }
 0x1fd   :  { %v363_v37 = vpop.xlane.xlu0 %362 }
 0x1fe   :  { %546 = vpow2.f32 %v370_v36  ;;  %v367_v25 = vsub.f32 %v351_v28, %v363_v37 }
 0x200   :  { %v374_v38 = vmul.f32 1.442695, %v367_v25 }
 0x201   :  { %v543_v39 = vpop.eup %542 }
 0x202   :  { %548 = vpow2.f32 %v374_v38  ;;  %v382_v40 = vsel %vm187_vm12, %v543_v39, 0.0 }
 0x203   :  { %383 = vadd.xlane.f32.xlu0 %v382_v40 }
 0x204   :  { %v545_v41 = vpop.eup %544 }
 0x205   :  { %v376_v42 = vsel %vm187_vm12, %v545_v41, 0.0 }
 0x206   :  { %377 = vadd.xlane.f32.xlu1 %v376_v42 }
 0x208   :  { %v547_v43 = vpop.eup %546 }
 0x209   :  { %v379_v16 = vsel %vm187_vm12, %v547_v43, 0.0 }
 0x20a   :  { %380 = vadd.xlane.f32.xlu1 %v379_v16 }
 0x20c   :  { %v549_v44 = vpop.eup %548 }
 0x20d   :  { %v385_v45 = vsel %vm187_vm12, %v549_v44, 0.0 }
 0x20e   :  { %386 = vadd.xlane.f32.xlu0 %v385_v45 }
 0x290   :  { %v384_v46 = vpop.xlane.xlu0 %383 }
 0x291   :  { %550 = vrcp.f32 %v384_v46 }
 0x293   :  { %v378_v47 = vpop.xlane.xlu1 %377 }
 0x294   :  { %552 = vrcp.f32 %v378_v47 }
 0x297   :  { %v381_v48 = vpop.xlane.xlu1 %380 }
 0x298   :  { %554 = vrcp.f32 %v381_v48 }
 0x29b   :  { %v551_v49 = vpop.eup %550  ;;  %v387_v2 = vpop.xlane.xlu0 %386 }
 0x29c   :  { %556 = vrcp.f32 %v387_v2  ;;  %v394_v50 = vmul.f32 %v551_v49, %v543_v39 }
 0x29e   :  { %v553_v51 = vpop.eup %552  ;;  %433 = vxpose.xlu0.b32.start [1/2] (short) (narrow) %v394_v50, 32 }
 0x29f   :  { %v392_v52 = vmul.f32 %v553_v51, %v545_v41 }
 0x2a1   :  { %396 = vxpose.xlu1.b32.start [1/2] (short) (narrow) %v392_v52, 32 }
 0x2a2   :  { %v555_v53 = vpop.eup %554 }
 0x2a3   :  { %v393_v54 = vmul.f32 %v555_v53, %v547_v43 }
 0x2a5   :  { %397 = vxpose.xlu1.b32.end [2/2] (short) (narrow) %v393_v54, 32 }
 0x2a6   :  { %v557_v55 = vpop.eup %556 }
 0x2a7   :  { %v395_v56 = vmul.f32 %v557_v55, %v549_v44 }
 0x2a9   :  { %434 = vxpose.xlu0.b32.end [2/2] (short) (narrow) %v395_v56, 32 }
 0x321   :  { %v412_v57 = vpop.trf.xlu1 }
 0x322   :  { %429 = vst.msk [vmem:[%s816_s3] sm:$0xff] %vm428_vm15, %v412_v57 }
 0x325   :  { %v449_v58 = vpop.trf.xlu0  ;;  %v413_v59 = vpop.trf.xlu1 }
 0x326   :  { %501 = vst.msk [vmem:[%s816_s3 + $0x20] sm:$0xff] %vm428_vm15, %v449_v58  ;;  %430 = vst.msk [vmem:[%s816_s3 + $0x8] sm:$0xff] %vm428_vm15, %v413_v59 }
 0x329   :  { %v450_v60 = vpop.trf.xlu0  ;;  %v414_v61 = vpop.trf.xlu1 }
 0x32a   :  { %502 = vst.msk [vmem:[%s816_s3 + $0x28] sm:$0xff] %vm428_vm15, %v450_v60  ;;  %431 = vst.msk [vmem:[%s816_s3 + $0x10] sm:$0xff] %vm428_vm15, %v414_v61 }
 0x32d   :  { %v451_v62 = vpop.trf.xlu0  ;;  %v415_v63 = vpop.trf.xlu1 }
 0x32e   :  { %503 = vst.msk [vmem:[%s816_s3 + $0x30] sm:$0xff] %vm428_vm15, %v451_v62  ;;  %432 = vst.msk [vmem:[%s816_s3 + $0x18] sm:$0xff] %vm428_vm15, %v415_v63 }
 0x331   :  { %v452_v3 = vpop.trf.xlu0 }
 0x332   :  { %504 = vst.msk [vmem:[%s816_s3 + $0x38] sm:$0xff] %vm428_vm15, %v452_v3 }

</bundles_post_ra>
